<compile_context>
chip_gen: v5e
topology: v5e:2x2
jax: 0.10.0
libtpu: 0.0.40
codegen_flags: <defaults>
</compile_context>

<pallas_src>
import functools
import math

import jax
import jax.numpy as jnp
from jax import lax
from jax.experimental import pallas as pl
from jax.experimental.pallas import tpu as pltpu


def _triple(x):
    return (x, x, x) if isinstance(x, int) else tuple(x)


def _out_size(n, k, s, p, d):
    return (n + 2 * p - d * (k - 1) - 1) // s + 1


def _round_up(x, m):
    return ((x + m - 1) // m) * m


def _pick_tile(total, target, granule):
    """Largest multiple of `granule` <= min(target, total) dividing `total`
    (total must be a multiple of granule)."""
    cand = min(target, total)
    cand -= cand % granule
    cand = max(cand, granule)
    while cand > granule:
        if total % cand == 0:
            return cand
        cand -= granule
    return granule


# ----------------------------------------------------------------------------
# Pallas kernels: grouped column matmul + bias (the conv hot path)
# ----------------------------------------------------------------------------
def _gm_kernel_single(c_ref, w_ref, b_ref, o_ref):
    # Single k-step path: the whole CK contraction fits one block.
    # c_ref: (1, 1, CK, l_tile) bf16 | w_ref: (1, Coutp, CK) bf16
    # b_ref: (1, Coutp, 128) f32     | o_ref: (1, 1, Coutp, l_tile) f32
    acc = jnp.dot(w_ref[0], c_ref[0, 0], preferred_element_type=jnp.float32)
    o_ref[0, 0] = (acc + b_ref[0, :, 0:1]).astype(o_ref.dtype)


def _gm_kernel_reduce(c_ref, w_ref, b_ref, o_ref, acc_ref, *, ck_tile, w_resident):
    # CK-tiled reduction path (grid axis 3 is 'arbitrary').
    # c_ref: (1, 1, ck_tile, l_tile) bf16
    # w_ref: (1, CKp, Coutp) bf16 (resident) or (1, ck_tile, Coutp) bf16 (streamed)
    # b_ref: (1, Coutp, 128) f32 | o_ref: (1, 1, Coutp, l_tile) f32
    # acc_ref: (Coutp, l_tile) f32 scratch, persists across the kt axis.
    kt = pl.program_id(3)

    @pl.when(kt == 0)
    def _init():
        # Fold the bias into the accumulator init -> no finalize add.
        acc_ref[...] = jnp.broadcast_to(b_ref[0, :, 0:1], acc_ref.shape)

    if w_resident:
        k0 = pl.multiple_of(kt * ck_tile, 128)
        w_blk = w_ref[0, pl.ds(k0, ck_tile), :]          # (ck_tile, Coutp)
    else:
        w_blk = w_ref[0]                                 # (ck_tile, Coutp)

    # (Coutp, l_tile) += w_blk^T @ c  (contract the shared CK / sublane dim)
    acc_ref[...] += lax.dot_general(
        w_blk, c_ref[0, 0], (((0,), (0,)), ((), ())),
        preferred_element_type=jnp.float32)

    @pl.when(kt == pl.num_programs(3) - 1)
    def _finalize():
        o_ref[0, 0] = acc_ref[...].astype(o_ref.dtype)


def pallas_grouped_matmul(cols, w, b, *, l_tile_target=1024, ck_tile_target=512,
                          ck_single_max=2048, vmem_budget=40 * 1024 * 1024):
    """cols: (N, G, CKg, L) (bf16 preferred); w: (G, Coutg, CKg); b: (G, Coutg)
       -> (N, G, Coutg, L) float32 with lane-dense L."""
    N, G, CKg, L = cols.shape
    Coutg = w.shape[1]
    compute_dtype = jnp.bfloat16

    Coutp = _round_up(Coutg, 16)          # bf16 sublane granule (review #7)
    Lp = _round_up(L, 128)                # lane-dense output

    single = 0 < CKg <= ck_single_max
    if single:
        # Block covers the full CK dim -> no divisibility requirement on it, no
        # pad copy of the dominant column stream, reduction axis collapses away.
        CKp, ck_tile = CKg, CKg
    else:
        CKp = _round_up(CKg, 128)
        ck_tile = _pick_tile(CKp, ck_tile_target, 128)
    # Keep the per-group weight resident in VMEM unless it is itself large.
    w_resident = (not single) and (2 * CKp * Coutp * 2 <= 8 * 1024 * 1024)

    l_tile = _pick_tile(Lp, l_tile_target, 128)
    # v7x megacore: keep at least 2 units of parallel work when possible.
    while N * G * (Lp // l_tile) < 2 and l_tile > 128:
        nl = _pick_tile(Lp, l_tile // 2, 128)
        if nl == l_tile:
            break
        l_tile = nl

    def _vmem_need(lt):
        ck_blk = CKp if single else ck_tile
        need = 2 * ck_blk * lt * 2                                    # cols dbl-buf
        need += 2 * (CKp if (single or w_resident) else ck_tile) * Coutp * 2
        need += 2 * Coutp * 128 * 4                                   # bias
        need += 2 * Coutp * lt * 4                                    # out dbl-buf
        if not single:
            need += Coutp * lt * 4                                    # acc scratch
        return need

    # Budget against v7x's 64 MiB physical VMEM (v5e/v6e have 128 MiB).
    while _vmem_need(l_tile) > vmem_budget and l_tile > 128:
        nl = _pick_tile(Lp, l_tile // 2, 128)
        if nl == l_tile:
            break
        l_tile = nl
    vmem_limit = int(min(max(32 * 1024 * 1024, 2 * _vmem_need(l_tile)),
                         48 * 1024 * 1024))

    cols_p = cols.astype(compute_dtype)
    if CKp != CKg or Lp != L:          # usually a no-op (producers emit bf16 cols)
        cols_p = jnp.pad(cols_p, ((0, 0), (0, 0), (0, CKp - CKg), (0, Lp - L)))
    w_p = jnp.pad(w.astype(compute_dtype),
                  ((0, 0), (0, Coutp - Coutg), (0, CKp - CKg)))       # (G,Coutp,CKp)
    b_p = jnp.broadcast_to(
        jnp.pad(b.astype(jnp.float32), ((0, 0), (0, Coutp - Coutg)))[:, :, None],
        (G, Coutp, 128))                                              # lane-dense bias

    cost = pl.CostEstimate(
        flops=int(2 * N * G * Lp * CKp * Coutp),
        transcendentals=0,
        bytes_accessed=int(N * G * CKp * Lp * 2 + G * Coutp * CKp * 2
                           + N * G * Coutp * Lp * 4),
    )

    if single:
        grid = (N, G, Lp // l_tile)
        kernel = _gm_kernel_single
        in_specs = [
            pl.BlockSpec((1, 1, CKp, l_tile), lambda n, g, lt: (n, g, 0, lt)),
            pl.BlockSpec((1, Coutp, CKp), lambda n, g, lt: (g, 0, 0)),
            pl.BlockSpec((1, Coutp, 128), lambda n, g, lt: (g, 0, 0)),
        ]
        out_spec = pl.BlockSpec((1, 1, Coutp, l_tile), lambda n, g, lt: (n, g, 0, lt))
        scratch = []
        dims = ("parallel", "parallel", "parallel")
    else:
        w_p = jnp.swapaxes(w_p, 1, 2)     # (G, CKp, Coutp): dyn slice on sublanes
        grid = (N, G, Lp // l_tile, CKp // ck_tile)
        kernel = functools.partial(_gm_kernel_reduce, ck_tile=ck_tile,
                                   w_resident=w_resident)
        if w_resident:
            w_spec = pl.BlockSpec((1, CKp, Coutp), lambda n, g, lt, kt: (g, 0, 0))
        else:
            w_spec = pl.BlockSpec((1, ck_tile, Coutp), lambda n, g, lt, kt: (g, kt, 0))
        in_specs = [
            pl.BlockSpec((1, 1, ck_tile, l_tile),
                         lambda n, g, lt, kt: (n, g, kt, lt)),
            w_spec,
            pl.BlockSpec((1, Coutp, 128), lambda n, g, lt, kt: (g, 0, 0)),
        ]
        out_spec = pl.BlockSpec((1, 1, Coutp, l_tile),
                                lambda n, g, lt, kt: (n, g, 0, lt))
        scratch = [pltpu.VMEM((Coutp, l_tile), jnp.float32)]
        dims = ("parallel", "parallel", "parallel", "arbitrary")

    out = pl.pallas_call(
        kernel,
        out_shape=jax.ShapeDtypeStruct((N, G, Coutp, Lp), jnp.float32),
        grid=grid,
        in_specs=in_specs,
        out_specs=out_spec,
        scratch_shapes=scratch,
        compiler_params=pltpu.CompilerParams(
            dimension_semantics=dims, vmem_limit_bytes=vmem_limit),
        cost_estimate=cost,
    )(cols_p, w_p, b_p)
    return out[:, :, :Coutg, :L]


# ----------------------------------------------------------------------------
# Deformable im2col: trilinear sampling at (base grid + offsets).  Data-
# dependent gather in JAX glue (ONE fused 8-corner gather, bf16 result); the
# matmul that consumes it lives in the Pallas kernel above.
# ----------------------------------------------------------------------------
def deform_im2col(x, offsets, kernel_size, stride, padding, dilation, offset_groups):
    """Returns columns (N, C*K, L) in bf16, channel-major (C, K) ordering."""
    N, C, D, H, W = x.shape
    kd, kh, kw = kernel_size
    K = kd * kh * kw
    sd, sh, sw = stride
    p_d, p_h, p_w = padding
    dd, dh, dw = dilation
    Do = _out_size(D, kd, sd, p_d, dd)
    Ho = _out_size(H, kh, sh, p_h, dh)
    Wo = _out_size(W, kw, sw, p_w, dw)
    L = Do * Ho * Wo
    og = offset_groups
    Cg = C // og

    # TODO(synk): offset channel layout assumed (offset_groups, K, 3) with
    # (d, h, w) component order; some implementations interleave differently.
    off = offsets.reshape(N, og, K, 3, Do, Ho, Wo).astype(jnp.float32)

    base_d = (jnp.arange(Do) * sd - p_d).astype(jnp.float32)
    base_h = (jnp.arange(Ho) * sh - p_h).astype(jnp.float32)
    base_w = (jnp.arange(Wo) * sw - p_w).astype(jnp.float32)
    kdd, khh, kww = jnp.meshgrid(jnp.arange(kd) * dd, jnp.arange(kh) * dh,
                                 jnp.arange(kw) * dw, indexing="ij")
    kdd = kdd.reshape(K).astype(jnp.float32)
    khh = khh.reshape(K).astype(jnp.float32)
    kww = kww.reshape(K).astype(jnp.float32)

    # sampling positions: (N, og, K, Do, Ho, Wo)
    pd = (base_d[None, None, None, :, None, None]
          + kdd[None, None, :, None, None, None] + off[:, :, :, 0])
    ph = (base_h[None, None, None, None, :, None]
          + khh[None, None, :, None, None, None] + off[:, :, :, 1])
    pw = (base_w[None, None, None, None, None, :]
          + kww[None, None, :, None, None, None] + off[:, :, :, 2])

    d0 = jnp.floor(pd)
    h0 = jnp.floor(ph)
    w0 = jnp.floor(pw)
    fd, fh, fw = pd - d0, ph - h0, pw - w0
    d0i = d0.astype(jnp.int32)
    h0i = h0.astype(jnp.int32)
    w0i = w0.astype(jnp.int32)

    idx_c, wgt_c = [], []
    for di in (0, 1):
        for hi in (0, 1):
            for wi in (0, 1):
                dic, hic, wic = d0i + di, h0i + hi, w0i + wi
                valid = ((dic >= 0) & (dic < D) & (hic >= 0) & (hic < H)
                         & (wic >= 0) & (wic < W))
                dcc = jnp.clip(dic, 0, D - 1)
                hcc = jnp.clip(hic, 0, H - 1)
                wcc = jnp.clip(wic, 0, W - 1)
                idx_c.append(dcc * (H * W) + hcc * W + wcc)
                wgt = ((fd if di else 1.0 - fd)
                       * (fh if hi else 1.0 - fh)
                       * (fw if wi else 1.0 - fw))
                wgt_c.append(wgt * valid.astype(jnp.float32))

    idx8 = jnp.stack(idx_c, axis=2)            # (N, og, 8, K, Do, Ho, Wo) int32
    wgt8 = jnp.stack(wgt_c, axis=2)            # (N, og, 8, K, Do, Ho, Wo) f32

    # ONE gather over all 8 trilinear corners (bf16 source halves gather bytes),
    # then a fused weighted sum over the corner axis; columns written in bf16.
    xg = x.astype(jnp.bfloat16).reshape(N, og, Cg, D * H * W)
    idx_flat = idx8.reshape(N, og, 1, 8 * K * L)
    vals = jnp.take_along_axis(xg, idx_flat, axis=3)       # (N, og, Cg, 8*K*L)
    vals = vals.reshape(N, og, Cg, 8, K * L).astype(jnp.float32)
    wgt_flat = wgt8.reshape(N, og, 1, 8, K * L)
    cols = jnp.sum(vals * wgt_flat, axis=3)                # (N, og, Cg, K*L) f32
    # (og, Cg, K) flattening is exactly channel-major (C, K): no transpose.
    return cols.reshape(N, C * K, L).astype(jnp.bfloat16)


# ----------------------------------------------------------------------------
# _DConvBase parameters (deterministic, in-script)
# ----------------------------------------------------------------------------
def make_dconv_base_params(key, in_channels, out_channels, kernel_size,
                           groups=1, offset_groups=1, bias=True):
    kd, kh, kw = kernel_size
    K = kd * kh * kw
    deform_out = 3 * offset_groups * K
    # deform_params Conv3d: init='zero' per the module
    w_off = jnp.zeros((deform_out, in_channels, kd, kh, kw), jnp.float32)
    b_off = jnp.zeros((deform_out,), jnp.float32)
    k1, k2 = jax.random.split(key)
    fan_in = (in_channels // groups) * K
    bound = 1.0 / math.sqrt(fan_in)
    w = jax.random.uniform(k1, (out_channels, in_channels // groups, kd, kh, kw),
                           jnp.float32, -bound, bound)
    if bias:
        b = jax.random.uniform(k2, (out_channels,), jnp.float32, -bound, bound)
    else:
        b = jnp.zeros((out_channels,), jnp.float32)
    return dict(w_off=w_off, b_off=b_off, w=w, b=b)


# ----------------------------------------------------------------------------
# _DConvBase.forward
# ----------------------------------------------------------------------------
def dconv_base_forward(x, params, *, kernel_size, stride=1, padding=0,
                       dilation=1, groups=1, offset_groups=1,
                       l_tile_target=1024, ck_tile_target=512, ck_single_max=2048):
    kernel_size = _triple(kernel_size)
    stride = _triple(stride)
    padding = _triple(padding)
    dilation = _triple(dilation)
    N, C, D, H, W = x.shape
    K = kernel_size[0] * kernel_size[1] * kernel_size[2]

    # 1) deform_params: ordinary (zero-init) Conv3d producing offsets.
    #    Per the perf review (#9) this uses XLA's native conv: the output has
    #    only 3*og*K channels, so it is pure bandwidth, and this avoids a 27x
    #    im2col inflation of x in HBM.
    offsets = lax.conv_general_dilated(
        x, params["w_off"],
        window_strides=stride, padding=[(p, p) for p in padding],
        rhs_dilation=dilation,
        dimension_numbers=("NCDHW", "OIDHW", "NCDHW"),
        feature_group_count=1,
    ) + params["b_off"][None, :, None, None, None]
    Do, Ho, Wo = offsets.shape[2:]
    L = Do * Ho * Wo

    # 2) deform_conv: trilinear sampling (bf16 columns) + grouped matmul as a
    #    single Pallas call with groups folded into the grid.
    cols = deform_im2col(x, offsets, kernel_size, stride, padding, dilation,
                         offset_groups)                    # (N, C*K, L) bf16
    Cout = params["w"].shape[0]
    cout_g = Cout // groups
    ckg = (C // groups) * K
    w_g = params["w"].reshape(groups, cout_g, ckg)
    b_g = params["b"].reshape(groups, cout_g)
    y = pallas_grouped_matmul(cols.reshape(N, groups, ckg, L), w_g, b_g,
                              l_tile_target=l_tile_target,
                              ck_tile_target=ck_tile_target,
                              ck_single_max=ck_single_max)
    # (N, G, cout_g, L) is already channel-major: reshape only, no transpose.
    return y.reshape(N, Cout, Do, Ho, Wo)


# ----------------------------------------------------------------------------
# Reference (zero-init offsets => deformable conv == standard Conv3d)
# ----------------------------------------------------------------------------
def _conv3d_reference(x, w, b, stride, padding, dilation, groups):
    # bf16-rounded inputs + f32 accumulation, matching the kernel's MXU path.
    xb = x.astype(jnp.bfloat16).astype(jnp.float32)
    wb = w.astype(jnp.bfloat16).astype(jnp.float32)
    st, pad, dil = _triple(stride), _triple(padding), _triple(dilation)
    y = lax.conv_general_dilated(
        xb, wb, window_strides=st, padding=[(p, p) for p in pad],
        rhs_dilation=dil, dimension_numbers=("NCDHW", "OIDHW", "NCDHW"),
        feature_group_count=groups, precision=lax.Precision.HIGHEST)
    return y + b[None, :, None, None, None]


if __name__ == "__main__":
    key = jax.random.PRNGKey(0)
    kx1, kp1, kx2, kp2 = jax.random.split(key, 4)
    ks, st, pad, dil = 3, 1, 1, 1

    # --- Test 1: single-k-step path (full-CK block), groups=1, offset_groups=1
    N, Cin, Cout = 2, 4, 8
    D, H, W = 4, 8, 8
    x = jax.random.normal(kx1, (N, Cin, D, H, W), jnp.float32)
    params = make_dconv_base_params(kp1, Cin, Cout, _triple(ks),
                                    groups=1, offset_groups=1)
    fwd = jax.jit(functools.partial(
        dconv_base_forward, kernel_size=ks, stride=st, padding=pad,
        dilation=dil, groups=1, offset_groups=1))
    out = jax.block_until_ready(fwd(x, params))
    assert out.shape == (N, Cout, D, H, W), out.shape
    ref = _conv3d_reference(x, params["w"], params["b"], st, pad, dil, 1)
    err = float(jnp.max(jnp.abs(out - ref)))
    assert jnp.allclose(out, ref, rtol=1e-2, atol=1e-2), f"test1 max_err={err}"

    # --- Test 2: CK-reduction path + resident-weight pl.ds slicing,
    #             groups=2, offset_groups=2 (validates grouped mapping too)
    N2, C2, Cout2 = 1, 16, 8
    D2, H2, W2 = 4, 4, 8
    x2 = jax.random.normal(kx2, (N2, C2, D2, H2, W2), jnp.float32)
    params2 = make_dconv_base_params(kp2, C2, Cout2, _triple(ks),
                                     groups=2, offset_groups=2)
    fwd2 = jax.jit(functools.partial(
        dconv_base_forward, kernel_size=ks, stride=st, padding=pad,
        dilation=dil, groups=2, offset_groups=2,
        ck_single_max=0, ck_tile_target=128))   # force the CK-tiled path
    out2 = jax.block_until_ready(fwd2(x2, params2))
    assert out2.shape == (N2, Cout2, D2, H2, W2), out2.shape
    ref2 = _conv3d_reference(x2, params2["w"], params2["b"], st, pad, dil, 2)
    err2 = float(jnp.max(jnp.abs(out2 - ref2)))
    assert jnp.allclose(out2, ref2, rtol=1e-2, atol=1e-2), f"test2 max_err={err2}"

    print("KERNEL_OK")
</pallas_src>

<mosaic_0001>
module attributes {stable_mosaic.version = 11 : i64} {
  func.func @_gm_kernel_single(%arg0: i32, %arg1: i32, %arg2: i32, %arg3: memref<1x1x108x256xbf16, #tpu.memory_space<vmem>>, %arg4: memref<1x16x108xbf16, #tpu.memory_space<vmem>>, %arg5: memref<1x16x128xf32, #tpu.memory_space<vmem>>, %arg6: memref<1x1x16x256xf32, #tpu.memory_space<vmem>>) attributes {dimension_semantics = [#tpu.dimension_semantics<parallel>, #tpu.dimension_semantics<parallel>, #tpu.dimension_semantics<parallel>], iteration_bounds = array<i64: 2, 1, 1>, scalar_prefetch = 0 : i64, scratch_operands = 0 : i64, tpu.core_type = #tpu.core_type<tc>, window_params = [{transform_indices = @transform_0, window_bounds = array<i64: 1, 1, 108, 256>}, {transform_indices = @transform_1, window_bounds = array<i64: 1, 16, 108>}, {transform_indices = @transform_2, window_bounds = array<i64: 1, 16, 128>}, {transform_indices = @transform_3, window_bounds = array<i64: 1, 1, 16, 256>}]} {
    %c0 = arith.constant 0 : index
    %c0_0 = arith.constant 0 : index
    %c0_1 = arith.constant 0 : index
    %0 = vector.load %arg4[%c0, %c0_0, %c0_1] : memref<1x16x108xbf16, #tpu.memory_space<vmem>>, vector<1x16x108xbf16>
    %1 = vector.shape_cast %0 : vector<1x16x108xbf16> to vector<16x108xbf16>
    %c0_2 = arith.constant 0 : index
    %c0_3 = arith.constant 0 : index
    %c0_4 = arith.constant 0 : index
    %c0_5 = arith.constant 0 : index
    %2 = vector.load %arg3[%c0_2, %c0_3, %c0_4, %c0_5] : memref<1x1x108x256xbf16, #tpu.memory_space<vmem>>, vector<1x1x108x256xbf16>
    %3 = vector.shape_cast %2 : vector<1x1x108x256xbf16> to vector<108x256xbf16>
    %cst = arith.constant dense<0.000000e+00> : vector<16x256xf32>
    %4 = tpu.matmul %1, %3, %cst {dimension_numbers = #tpu.dot_dimension_numbers<[1], [0], [0], [1], [0, 0, 1, 1], [], []>} : vector<16x108xbf16>, vector<108x256xbf16>, vector<16x256xf32> -> vector<16x256xf32>
    %c0_6 = arith.constant 0 : index
    %c0_7 = arith.constant 0 : index
    %c0_8 = arith.constant 0 : index
    %5 = vector.load %arg5[%c0_6, %c0_7, %c0_8] : memref<1x16x128xf32, #tpu.memory_space<vmem>>, vector<1x16x1xf32>
    %6 = vector.shape_cast %5 : vector<1x16x1xf32> to vector<16x1xf32>
    %7 = vector.broadcast %6 : vector<16x1xf32> to vector<16x256xf32>
    %8 = arith.addf %4, %7 : vector<16x256xf32>
    %c0_9 = arith.constant 0 : index
    %c0_10 = arith.constant 0 : index
    %c0_11 = arith.constant 0 : index
    %c0_12 = arith.constant 0 : index
    %9 = vector.load %arg6[%c0_9, %c0_10, %c0_11, %c0_12] : memref<1x1x16x256xf32, #tpu.memory_space<vmem>>, vector<1x1x16x256xf32>
    %10 = vector.shape_cast %9 : vector<1x1x16x256xf32> to vector<16x256xf32>
    %11 = vector.shape_cast %8 : vector<16x256xf32> to vector<1x1x16x256xf32>
    tpu.vector_store %arg6[%c0_9, %c0_10, %c0_11, %c0_12], %11 {strides = array<i32>} : memref<1x1x16x256xf32, #tpu.memory_space<vmem>>, vector<1x1x16x256xf32>,
    return
  }
  func.func @transform_0(%arg0: i32, %arg1: i32, %arg2: i32) -> (i32, i32, i32, i32) {
    %c0_i32 = arith.constant 0 : i32
    %c0_i32_0 = arith.constant 0 : i32
    return %arg0, %arg1, %c0_i32, %arg2 : i32, i32, i32, i32
  }
  func.func @transform_1(%arg0: i32, %arg1: i32, %arg2: i32) -> (i32, i32, i32) {
    %c0_i32 = arith.constant 0 : i32
    %c0_i32_0 = arith.constant 0 : i32
    %c0_i32_1 = arith.constant 0 : i32
    return %arg1, %c0_i32, %c0_i32_0 : i32, i32, i32
  }
  func.func @transform_2(%arg0: i32, %arg1: i32, %arg2: i32) -> (i32, i32, i32) {
    %c0_i32 = arith.constant 0 : i32
    %c0_i32_0 = arith.constant 0 : i32
    %c0_i32_1 = arith.constant 0 : i32
    return %arg1, %c0_i32, %c0_i32_0 : i32, i32, i32
  }
  func.func @transform_3(%arg0: i32, %arg1: i32, %arg2: i32) -> (i32, i32, i32, i32) {
    %c0_i32 = arith.constant 0 : i32
    %c0_i32_0 = arith.constant 0 : i32
    return %arg0, %arg1, %c0_i32, %arg2 : i32, i32, i32, i32
  }
}

</mosaic_0001>

<bundles_post_ra>
// kernel: dconv_base_forward.1
= control target key start
LH: loop header
LB: loop body
LE: loop exit
PB: predicated region body
PF: predicated region fallthrough
CT: control target
= control target key end

     0   :  { %s730_s12 = smov 0   ;;  %s732_s13 = smov 0   ;;  %s806_s0 = inlined_call_operand.vmem [shape: bf16[2,1,108,256], index: 0, kind: input, shape index: {}]   ;;  %s807_s1 = inlined_call_operand.vmem [shape: bf16[1,16,108], index: 1, kind: input, shape index: {}]   ;;  %s808_s2 = inlined_call_operand.vmem [shape: f32[1,16,128], index: 2, kind: input, shape index: {}]   ;;  %s809_s3 = inlined_call_operand.vmem [shape: f32[2,1,16,256], index: 3, kind: output, shape index: {}]  }
   0x1   :  { %s734_s14 = smov 0  }
   0x2 LB: > { %s32_s15 = sadd.s32 1, %s703_s13  ;;  %p574_p0 = scmp.ge.s32.totalorder %s707_s14, 1  ;;  %s707_s14 = sphi %s734_s14, %s13_s14   ;;  %s703_s13 = sphi %s732_s13, %s811_s13   ;;  %s699_s12 = sphi %s730_s12, %s810_s12  }
   0x3   : > { %p34_p1 = scmp.ge.s32.totalorder %s32_s15, 2  ;;  %p193_p2 = scmp.lt.s32.totalorder %s707_s14, 3 }
   0x5   : > { %s813_s15 = smov (%p34_p1, %s32_s15), 0  ;;  %p194_p3 = pnand %p574_p0, %p193_p2 }
   0x6   : > { %p244_p4 = scmp.lt.s32.totalorder (!%p194_p3), %s699_s12, 1 }
   0x7   : > { %197 = sbr.rel (%p194_p3) target bundleno = 185 (0xb9), region = 32 }
   0xc   : > { %s815_s12 = smov (!%p244_p4, %s699_s12), 1  ;;  %vm387_vm0 = vcmask 1045504   ;;  %v709_v13 = vmov 0   ;;  %v298_v14 = vld [vmem:[%s808_s2] sm:$0xff]  ;;  %v299_v26 = vld [vmem:[%s808_s2 + $0x8] sm:$0xff]  ;;  %vm383_vm1 = vcmask 883712  }
   0xd   : > { %s658_s16 = smul.u32 112, %s815_s12  ;;  %684 = vset.pattern.permute.xlu0 %v709_v13  ;;  %v643_v47 = vld [vmem:[%s807_s1] sm:$0xff]  ;;  %s642_s26 = sshll.u32 %s815_s12, 5 }
   0xe   : > { %302 = vperm.xlu0 %684, %v298_v14   ;;  %s279_s29 = scalar_lea.vmem %s809_s3, %s642_s26 }
   0xf   : > { %s754_s19 = scalar_lea.vmem %s806_s0, %s658_s16 }
  0x10   : > { %v632_v0 = vld [vmem:[%s754_s19 + $0x60] sm:$0xf]  ;;  %v657_v1 = vld [vmem:[%s754_s19 + $0x64] sm:$0x30]  ;;  %v656_v2 = vld [vmem:[%s754_s19 + $0x64] sm:$0xf] }
  0x11   : > { %v633_v3 = vor.u32 %v657_v1, %v632_v0  ;;  %v634_v4 = vld [vmem:[%s754_s19 + $0x68] sm:$0x30]  ;;  %v624_v5 = vld [vmem:[%s754_s19 + $0x50] sm:$0xf]  ;;  %v655_v6 = vld [vmem:[%s754_s19 + $0x54] sm:$0xf0] }
  0x12   : > { %v637_v7 = vor.u32 %v656_v2, %v634_v4  ;;  %v654_v8 = vld [vmem:[%s754_s19 + $0x54] sm:$0xf]  ;;  %v626_v9 = vld [vmem:[%s754_s19 + $0x58] sm:$0xf0]  ;;  %v625_v12 = vor.u32 %v655_v6, %v624_v5  ;;  %v616_v16 = vld [vmem:[%s754_s19 + $0x40] sm:$0xf] }
  0x13   : > { %v389_v10 = vsel %vm387_vm0, %v633_v3, 0  ;;  %v629_v15 = vor.u32 %v654_v8, %v626_v9  ;;  %v653_v17 = vld [vmem:[%s754_s19 + $0x44] sm:$0xf0]  ;;  %v652_v18 = vld [vmem:[%s754_s19 + $0x44] sm:$0xf] }
  0x14   : > { %395 = vmatpush.bf16.msra.mxu0 %v389_v10  ;;  %v392_v11 = vsel %vm387_vm0, %v637_v7, 0  ;;  %v618_v19 = vld [vmem:[%s754_s19 + $0x48] sm:$0xf0]  ;;  %v617_v20 = vor.u32 %v653_v17, %v616_v16  ;;  %v608_v22 = vld [vmem:[%s754_s19 + $0x30] sm:$0xf] }
  0x15   : > { %409 = vmatpush.bf16.msra.mxu1 %v392_v11  ;;  %v621_v21 = vor.u32 %v652_v18, %v618_v19  ;;  %v651_v23 = vld [vmem:[%s754_s19 + $0x34] sm:$0xf0]  ;;  %v650_v24 = vld [vmem:[%s754_s19 + $0x34] sm:$0xf]  ;;  %v610_v25 = vld [vmem:[%s754_s19 + $0x38] sm:$0xf0] }
  0x16   : > { %v609_v27 = vor.u32 %v651_v23, %v608_v22  ;;  %v613_v28 = vor.u32 %v650_v24, %v610_v25  ;;  %v600_v29 = vld [vmem:[%s754_s19 + $0x20] sm:$0xf]  ;;  %v649_v30 = vld [vmem:[%s754_s19 + $0x24] sm:$0xf0]  ;;  %307 = vperm.xlu0 %684, %v299_v26   ;;  %v648_v31 = vld [vmem:[%s754_s19 + $0x24] sm:$0xf] }
  0x17   : > { %v602_v32 = vld [vmem:[%s754_s19 + $0x28] sm:$0xf0]  ;;  %v601_v33 = vor.u32 %v649_v30, %v600_v29  ;;  %v592_v35 = vld [vmem:[%s754_s19 + $0x10] sm:$0xf]  ;;  %v647_v36 = vld [vmem:[%s754_s19 + $0x14] sm:$0xf0] }
  0x18   : > { %396 = vmatpush.bf16.msra.mxu0 %v625_v12  ;;  %v605_v34 = vor.u32 %v648_v31, %v602_v32  ;;  %v646_v37 = vld [vmem:[%s754_s19 + $0x14] sm:$0xf]  ;;  %v594_v38 = vld [vmem:[%s754_s19 + $0x18] sm:$0xf0]  ;;  %v593_v39 = vor.u32 %v647_v36, %v592_v35  ;;  %v584_v41 = vld [vmem:[%s754_s19] sm:$0xf] }
  0x19   : > { %410 = vmatpush.bf16.msra.mxu1 %v629_v15  ;;  %v597_v40 = vor.u32 %v646_v37, %v594_v38  ;;  %v645_v42 = vld [vmem:[%s754_s19 + $0x4] sm:$0xf0]  ;;  %v644_v43 = vld [vmem:[%s754_s19 + $0x4] sm:$0xf]  ;;  %v586_v44 = vld [vmem:[%s754_s19 + $0x8] sm:$0xf0] }
  0x1a   : > { %v585_v45 = vor.u32 %v645_v42, %v584_v41  ;;  %v589_v46 = vor.u32 %v644_v43, %v586_v44 }
  0x1c   : > { %397 = vmatpush.bf16.msra.mxu0 %v617_v20 }
  0x1d   : > { %411 = vmatpush.bf16.msra.mxu1 %v621_v21 }
  0x20   : > { %398 = vmatpush.bf16.msra.mxu0 %v609_v27 }
  0x21   : > { %412 = vmatpush.bf16.msra.mxu1 %v613_v28 }
  0x24   : > { %399 = vmatpush.bf16.msra.mxu0 %v601_v33 }
  0x25   : > { %413 = vmatpush.bf16.msra.mxu1 %v605_v34 }
  0x28   : > { %400 = vmatpush.bf16.msra.mxu0 %v593_v39 }
  0x29   : > { %414 = vmatpush.bf16.msra.mxu1 %v597_v40 }
  0x2c   : > { %401 = vmatpush.bf16.msra.mxu0 %v585_v45 }
  0x2d   : > { %415 = vmatpush.bf16.msra.mxu1 %v589_v46 }
  0x2f   : > { %638 = vmatmul.msk.bf16.vlgmr.msra.gmra.mxu0 %vm383_vm1, %v643_v47 }
  0x30   : > { %639 = vmatmul.msk.bf16.vlgmr.msra.gmra.mxu1 %vm383_vm1, %v643_v47 }
  0x80   : > { %v303_v48 = vpop.permute.xlu0 %302 }
  0x88   : > { %v308_v53 = vpop.permute.xlu0 %307 }
  0xac   : > { %v403_v49 = vpop.f32.mrf.mxu0 }
  0xad   : > { %v404_v50 = vadd.f32 %v403_v49, %v303_v48  ;;  %v417_v51 = vpop.f32.mrf.mxu1 }
  0xae   : > { %v418_v52 = vadd.f32 %v417_v51, %v303_v48 }
  0xaf   : > { %422 = vst [vmem:[%s279_s29] sm:$0xff] %v404_v50 }
  0xb0   : > { %423 = vst [vmem:[%s279_s29 + $0x8] sm:$0xff] %v418_v52 }
  0xb4   : > { %v405_v54 = vpop.f32.mrf.mxu0 }
  0xb5   : > { %v406_v55 = vadd.f32 %v405_v54, %v308_v53  ;;  %v419_v56 = vpop.f32.mrf.mxu1 }
  0xb6   : > { %v420_v57 = vadd.f32 %v419_v56, %v308_v53 }
  0xb7   : > { %424 = vst [vmem:[%s279_s29 + $0x10] sm:$0xff] %v406_v55 }
  0xb8   : > { %425 = vst [vmem:[%s279_s29 + $0x18] sm:$0xff] %v420_v57 }
  0xb9 PF: > { %s13_s14 = sadd.s32 1, %s707_s14   ;;  %s810_s12 = smov %s703_s13 }
  0xba   : > { %p10_p5 = scmp.ge.s32.totalorder %s13_s14, 4   ;;  %s811_s13 = smov %s813_s15 }
  0xbc   :  { %12 = sbr.rel (!%p10_p5) target bundleno = 2 (0x2), region = 68 }

</bundles_post_ra>
